<compile_context>
chip_gen: v7x
topology: tpu7x:2x2x1
jax: 0.10.0
libtpu: 0.0.40
codegen_flags: <defaults>
</compile_context>

<pallas_src>
import jax
import jax.numpy as jnp
from jax.experimental import pallas as pl
from jax.experimental.pallas import tpu as pltpu


def _round_up(x, m):
    return (x + m - 1) // m * m


def conv1d_relu_kernel(x_ref, w_ref, b_ref, o_ref, acc_ref):
    """One grid step: accumulate one convolution tap.

    x_ref  : (C_in, TL)     tap-shifted input tile (tap k, batch b, len-tile j)
    w_ref  : (C_out, C_in)  weight slab for tap k
    b_ref  : (C_out, 1)     bias (resident)
    o_ref  : (C_out, TL)    output tile (resident across the tap axis)
    acc_ref: (C_out, TL)    f32 accumulator scratch
    """
    k = pl.program_id(2)

    @pl.when(k == 0)
    def _init():
        acc_ref[...] = jnp.zeros_like(acc_ref)

    # (C_out, C_in) @ (C_in, TL) -> (C_out, TL) on the MXU, f32 accumulation.
    acc_ref[...] += jnp.dot(w_ref[...], x_ref[...],
                            preferred_element_type=jnp.float32)

    # Bias add + ReLU + cast happen exactly once, on the last tap.
    @pl.when(k == pl.num_programs(2) - 1)
    def _finalize():
        y = acc_ref[...] + b_ref[...]
        o_ref[...] = jnp.maximum(y, 0.0).astype(o_ref.dtype)


def conv1d_relu(x, weight, bias, *, max_tile_l=512):
    """relu(conv1d(x, weight) + bias).

    x      : (N, C_in, L)        float32
    weight : (C_out, C_in, fs)   (torch.nn.Conv1d layout)
    bias   : (C_out,)
    returns: (N, C_out, L - fs + 1)
    """
    N, C_in, L = x.shape
    C_out, C_in_w, fs = weight.shape
    assert C_in == C_in_w, "in_channels mismatch"
    L_out = L - fs + 1
    assert L_out >= 1, "sequence shorter than filter"

    # Lane-dense output tile: multiple of 128, capped at max_tile_l so the
    # double-buffered tiles stay far below the v7x 64 MiB VMEM budget.
    tile_l = min(max_tile_l, _round_up(L_out, 128))
    L_out_pad = _round_up(L_out, tile_l)
    L_pad = L_out_pad + fs - 1

    x_pad = jnp.pad(x, ((0, 0), (0, 0), (0, L_pad - L)))
    # Tap-shifted views of x: (fs, N, C_in, L_out_pad).  fs is tiny (3..5);
    # this is the only data duplication and it makes every grid step a plain
    # rectangular DMA that the BlockSpec pipeline can double-buffer.
    x_taps = jnp.stack([x_pad[:, :, k:k + L_out_pad] for k in range(fs)], axis=0)
    # Tiny one-time weight rearrange so each tap is a clean (C_out, C_in) slab.
    w_taps = jnp.transpose(weight, (2, 0, 1))          # (fs, C_out, C_in)
    b2 = bias.reshape(C_out, 1)

    n_l_tiles = L_out_pad // tile_l
    itemsize = x.dtype.itemsize
    cost = pl.CostEstimate(
        flops=2 * N * C_out * C_in * fs * L_out_pad,
        transcendentals=0,
        bytes_accessed=(x_taps.size + w_taps.size + b2.size
                        + N * C_out * L_out_pad) * itemsize,
    )

    out = pl.pallas_call(
        conv1d_relu_kernel,
        out_shape=jax.ShapeDtypeStruct((N, C_out, L_out_pad), x.dtype),
        grid_spec=pltpu.PrefetchScalarGridSpec(
            num_scalar_prefetch=0,
            grid=(N, n_l_tiles, fs),          # reduction (taps) innermost
            in_specs=[
                # tap-shifted input tile: kernel sees (C_in, tile_l)
                pl.BlockSpec((None, None, C_in, tile_l),
                             lambda b, j, k: (k, b, 0, j)),
                # per-tap weight slab: kernel sees (C_out, C_in)
                pl.BlockSpec((None, C_out, C_in),
                             lambda b, j, k: (k, 0, 0)),
                # bias, resident across the whole grid
                pl.BlockSpec((C_out, 1), lambda b, j, k: (0, 0)),
            ],
            out_specs=pl.BlockSpec((None, C_out, tile_l),
                                   lambda b, j, k: (b, 0, j)),
            scratch_shapes=[pltpu.VMEM((C_out, tile_l), jnp.float32)],
        ),
        compiler_params=pltpu.CompilerParams(
            dimension_semantics=("parallel", "parallel", "arbitrary"),
        ),
        cost_estimate=cost,
    )(x_taps, w_taps, b2)

    # Drop the lane padding of the output length.
    return out[:, :, :L_out]


def conv1d_module_forward(x, params):
    """Equivalent of Conv1d.forward: [relu(conv_i(x)) for each filter size]."""
    return [conv1d_relu(x, w, b) for (w, b) in params]


def init_conv1d_params(key, in_channels, out_channels, filter_sizes):
    """xavier_uniform_ weights, constant 0.1 bias (matches init_params())."""
    params = []
    for k, fs in zip(jax.random.split(key, len(filter_sizes)), filter_sizes):
        fan_in, fan_out = in_channels * fs, out_channels * fs
        bound = (6.0 / (fan_in + fan_out)) ** 0.5
        w = jax.random.uniform(k, (out_channels, in_channels, fs),
                               dtype=jnp.float32, minval=-bound, maxval=bound)
        b = jnp.full((out_channels,), 0.1, dtype=jnp.float32)
        params.append((w, b))
    return params


def conv1d_relu_ref(x, weight, bias):
    """Plain-JAX reference with the same semantics as F.relu(nn.Conv1d(x))."""
    C_out, _, fs = weight.shape
    L_out = x.shape[-1] - fs + 1
    acc = jnp.zeros((x.shape[0], C_out, L_out), jnp.float32)
    for k in range(fs):
        acc = acc + jnp.einsum('oc,ncl->nol', weight[:, :, k],
                               x[:, :, k:k + L_out],
                               precision=jax.lax.Precision.HIGHEST)
    return jnp.maximum(acc + bias[None, :, None], 0.0)


if __name__ == "__main__":
    batch, in_channels, out_channels = 2, 8, 16
    seq_len = 32
    filter_sizes = (3, 4, 5)

    key = jax.random.PRNGKey(0)
    k_x, k_w = jax.random.split(key)
    x = jax.random.normal(k_x, (batch, in_channels, seq_len), dtype=jnp.float32)
    params = init_conv1d_params(k_w, in_channels, out_channels, filter_sizes)

    outs = conv1d_module_forward(x, params)
    outs = jax.block_until_ready(outs)

    for (w, b), fs, out in zip(params, filter_sizes, outs):
        ref = conv1d_relu_ref(x, w, b)
        assert out.shape == (batch, out_channels, seq_len - fs + 1), out.shape
        assert jnp.allclose(out, ref, atol=1e-4, rtol=1e-4), \
            float(jnp.max(jnp.abs(out - ref)))

    print("KERNEL_OK")
</pallas_src>

<mosaic_0001>
module attributes {stable_mosaic.version = 11 : i64} {
  func.func @conv1d_relu_kernel(%arg0: i32, %arg1: i32, %arg2: i32, %arg3: memref<1x1x8x128xf32, #tpu.memory_space<vmem>>, %arg4: memref<1x16x8xf32, #tpu.memory_space<vmem>>, %arg5: memref<16x1xf32, #tpu.memory_space<vmem>>, %arg6: memref<1x16x128xf32, #tpu.memory_space<vmem>>, %arg7: memref<16x128xf32, #tpu.memory_space<vmem>>) attributes {dimension_semantics = [#tpu.dimension_semantics<parallel>, #tpu.dimension_semantics<parallel>, #tpu.dimension_semantics<arbitrary>], iteration_bounds = array<i64: 2, 1, 3>, scalar_prefetch = 0 : i64, scratch_operands = 1 : i64, tpu.core_type = #tpu.core_type<tc>, window_params = [{transform_indices = @transform_0, window_bounds = array<i64: 1, 1, 8, 128>}, {transform_indices = @transform_1, window_bounds = array<i64: 1, 16, 8>}, {pipeline_mode = #tpu.pipeline_mode<synchronous>, transform_indices = @transform_2, window_bounds = array<i64: 16, 1>}, {transform_indices = @transform_3, window_bounds = array<i64: 1, 16, 128>}]} {
    %c0_i32 = arith.constant 0 : i32
    %0 = arith.cmpi eq, %arg2, %c0_i32 : i32
    %1 = arith.extui %0 : i1 to i32
    %c0_i32_0 = arith.constant 0 : i32
    %2 = arith.cmpi ne, %1, %c0_i32_0 : i32
    scf.if %2 {
      %cst_12 = arith.constant 0.000000e+00 : f32
      %14 = vector.broadcast %cst_12 : f32 to vector<16x128xf32>
      %c0_13 = arith.constant 0 : index
      %c0_14 = arith.constant 0 : index
      %15 = vector.load %arg7[%c0_13, %c0_14] : memref<16x128xf32, #tpu.memory_space<vmem>>, vector<16x128xf32>
      tpu.vector_store %arg7[%c0_13, %c0_14], %14 {strides = array<i32>} : memref<16x128xf32, #tpu.memory_space<vmem>>, vector<16x128xf32>,
    } else {
    }
    %c0 = arith.constant 0 : index
    %c0_1 = arith.constant 0 : index
    %3 = vector.load %arg7[%c0, %c0_1] : memref<16x128xf32, #tpu.memory_space<vmem>>, vector<16x128xf32>
    %c0_2 = arith.constant 0 : index
    %c0_3 = arith.constant 0 : index
    %c0_4 = arith.constant 0 : index
    %4 = vector.load %arg4[%c0_2, %c0_3, %c0_4] : memref<1x16x8xf32, #tpu.memory_space<vmem>>, vector<1x16x8xf32>
    %5 = vector.shape_cast %4 : vector<1x16x8xf32> to vector<16x8xf32>
    %c0_5 = arith.constant 0 : index
    %c0_6 = arith.constant 0 : index
    %c0_7 = arith.constant 0 : index
    %c0_8 = arith.constant 0 : index
    %6 = vector.load %arg3[%c0_5, %c0_6, %c0_7, %c0_8] : memref<1x1x8x128xf32, #tpu.memory_space<vmem>>, vector<1x1x8x128xf32>
    %7 = vector.shape_cast %6 : vector<1x1x8x128xf32> to vector<8x128xf32>
    %cst = arith.constant dense<0.000000e+00> : vector<16x128xf32>
    %8 = tpu.matmul %5, %7, %cst {dimension_numbers = #tpu.dot_dimension_numbers<[1], [0], [0], [1], [0, 0, 1, 1], [], []>} : vector<16x8xf32>, vector<8x128xf32>, vector<16x128xf32> -> vector<16x128xf32>
    %9 = arith.addf %3, %8 : vector<16x128xf32>
    %c0_9 = arith.constant 0 : index
    %c0_10 = arith.constant 0 : index
    %10 = vector.load %arg7[%c0_9, %c0_10] : memref<16x128xf32, #tpu.memory_space<vmem>>, vector<16x128xf32>
    tpu.vector_store %arg7[%c0_9, %c0_10], %9 {strides = array<i32>} : memref<16x128xf32, #tpu.memory_space<vmem>>, vector<16x128xf32>,
    %c2_i32 = arith.constant 2 : i32
    %11 = arith.cmpi eq, %arg2, %c2_i32 : i32
    %12 = arith.extui %11 : i1 to i32
    %c0_i32_11 = arith.constant 0 : i32
    %13 = arith.cmpi ne, %12, %c0_i32_11 : i32
    scf.if %13 {
      %c0_12 = arith.constant 0 : index
      %c0_13 = arith.constant 0 : index
      %14 = vector.load %arg7[%c0_12, %c0_13] : memref<16x128xf32, #tpu.memory_space<vmem>>, vector<16x128xf32>
      %c0_14 = arith.constant 0 : index
      %c0_15 = arith.constant 0 : index
      %15 = vector.load %arg5[%c0_14, %c0_15] : memref<16x1xf32, #tpu.memory_space<vmem>>, vector<16x1xf32>
      %16 = vector.broadcast %15 : vector<16x1xf32> to vector<16x128xf32>
      %17 = arith.addf %14, %16 : vector<16x128xf32>
      %cst_16 = arith.constant 0.000000e+00 : f32
      %18 = vector.broadcast %cst_16 : f32 to vector<16x128xf32>
      %19 = arith.maximumf %17, %18 : vector<16x128xf32>
      %c0_17 = arith.constant 0 : index
      %c0_18 = arith.constant 0 : index
      %c0_19 = arith.constant 0 : index
      %20 = vector.load %arg6[%c0_17, %c0_18, %c0_19] : memref<1x16x128xf32, #tpu.memory_space<vmem>>, vector<1x16x128xf32>
      %21 = vector.shape_cast %20 : vector<1x16x128xf32> to vector<16x128xf32>
      %22 = vector.shape_cast %19 : vector<16x128xf32> to vector<1x16x128xf32>
      tpu.vector_store %arg6[%c0_17, %c0_18, %c0_19], %22 {strides = array<i32>} : memref<1x16x128xf32, #tpu.memory_space<vmem>>, vector<1x16x128xf32>,
    } else {
    }
    return
  }
  func.func @transform_0(%arg0: i32, %arg1: i32, %arg2: i32) -> (i32, i32, i32, i32) {
    %c0_i32 = arith.constant 0 : i32
    %c0_i32_0 = arith.constant 0 : i32
    return %arg2, %arg0, %c0_i32, %arg1 : i32, i32, i32, i32
  }
  func.func @transform_1(%arg0: i32, %arg1: i32, %arg2: i32) -> (i32, i32, i32) {
    %c0_i32 = arith.constant 0 : i32
    %c0_i32_0 = arith.constant 0 : i32
    %c0_i32_1 = arith.constant 0 : i32
    return %arg2, %c0_i32, %c0_i32_0 : i32, i32, i32
  }
  func.func @transform_2(%arg0: i32, %arg1: i32, %arg2: i32) -> (i32, i32) {
    %c0_i32 = arith.constant 0 : i32
    %c0_i32_0 = arith.constant 0 : i32
    %c0_i32_1 = arith.constant 0 : i32
    return %c0_i32, %c0_i32_0 : i32, i32
  }
  func.func @transform_3(%arg0: i32, %arg1: i32, %arg2: i32) -> (i32, i32, i32) {
    %c0_i32 = arith.constant 0 : i32
    %c0_i32_0 = arith.constant 0 : i32
    return %arg0, %c0_i32, %arg1 : i32, i32, i32
  }
}

</mosaic_0001>

<bundles_post_ra>
// kernel: tpu_custom_call.1
= control target key start
LH: loop header
LB: loop body
LE: loop exit
PB: predicated region body
PF: predicated region fallthrough
CT: control target
= control target key end

     0   :  { %8 = vsyncpa [#allocation4], 0  ;;  %s850_s0 = inlined_call_operand.vmem [shape: f32[3,2,8,128], index: 0, kind: input, shape index: {}]   ;;  %s851_s1 = inlined_call_operand.vmem [shape: f32[3,16,8], index: 1, kind: input, shape index: {}]   ;;  %s852_s2 = inlined_call_operand.vmem [shape: f32[16,1], index: 2, kind: input, shape index: {}]   ;;  %s853_s3 = inlined_call_operand.hbm [shape: f32[2,16,128], index: 3, kind: output, shape index: {}]  }
   0x1   :  { %10 = vsyncpa [#allocation4 + $0x1], 0  ;;  %s693_s12 = smov 0   ;;  %s695_s13 = smov 0  }
   0x2   :  { %s697_s14 = smov 0   ;;  %s699_s15 = smov 0  }
   0x3   :  { %s701_s16 = smov 0   ;;  %s703_s17 = smov 0  }
   0x4   :  { %s705_s18 = smov 0   ;;  %s707_s19 = smov 0  }
   0x5 LB: > { %s467_s20 = sadd.s32 4294967295, %s666_s19   ;;  %s468_s21 = sadd.s32 4294967294, %s666_s19   ;;  %s666_s19 = sphi %s707_s19, %s16_s19   ;;  %s662_s18 = sphi %s705_s18, %s865_s18   ;;  %s658_s17 = sphi %s703_s17, %s864_s17   ;;  %s654_s16 = sphi %s701_s16, %s863_s16   ;;  %s650_s15 = sphi %s699_s15, %s862_s15   ;;  %s646_s14 = sphi %s697_s14, %s861_s14   ;;  %s642_s13 = sphi %s695_s13, %s860_s13   ;;  %s638_s12 = sphi %s693_s12, %s859_s12  }
   0x6   : > { %s28_s22 = sadd.s32 1, %s658_s17  ;;  %s35_s23 = sadd.s32 1, %s662_s18 }
   0x7   : > { %p29_p0 = scmp.ge.s32.totalorder %s28_s22, 3  ;;  %p131_p1 = scmp.ne.s32.totalorder %s646_s14, %s642_s13 }
   0x8   : > { %p132_p2 = scmp.eq.s32.totalorder %s467_s20, 5  ;;  %p137_p4 = scmp.ne.s32.totalorder %s642_s13, %s638_s12 }
   0x9   : > { %s867_s22 = smov (%p29_p0, %s28_s22), 0  ;;  %s869_s23 = smov (!%p29_p0, %s35_s23), %s662_s18 }
   0xa   : > { %p742_p3 = por %p132_p2, %p131_p1  ;;  %p37_p5 = scmp.ge.s32.totalorder %s869_s23, 2 }
   0xb   : > { %p138_p6 = scmp.eq.s32.totalorder %s468_s21, 5  ;;  %p471_p7 = scmp.ge.s32.totalorder %s666_s19, 1 }
   0xc   : > { %p181_p8 = scmp.lt.s32.totalorder %s666_s19, 7  ;;  %s871_s23 = smov (%p37_p5, %s869_s23), 0 }
   0xd   : > { %856 = sst [smem:[#allocation6_spill]] %s871_s23  ;;  %p752_p9 = por %p138_p6, %p137_p4 }
   0xe   : > { %p182_p10 = pnand %p471_p7, %p181_p8  ;;  %s116_s26 = ssub.s32 %s662_s18, %s871_s23 }
   0xf   : > { %s121_s27 = sadd.s32 1, %s646_s14  ;;  %p119_p11 = scmp.eq.s32.totalorder %s116_s26, 0 }
  0x10   : > { %185 = sbr.rel (%p182_p10) target bundleno = 290 (0x122), region = 32  ;;  %s213_s29 = sand.u32 (!%p182_p10), 1, %s642_s13  }
  0x11   : > { %s760_s28 = scalar_select %p119_p11, %s646_s14, %s121_s27  }
  0x12   : > { %p216_p12 = scmp.lt.s32.totalorder (!%p182_p10), %s650_s15, 2  ;;  %s472_s30 = sshll.u32 (!%p182_p10), %s213_s29, 4 }
  0x13   : > { %p218_p13 = scmp.lt.s32.totalorder (!%p182_p10), %s654_s16, 1  ;;  %s775_s23 = scalar_lea.vmem (!%p182_p10), [#allocation3], %s472_s30 }
  0x14   : > { %p477_p0 = scmp.ne.s32.totalorder (!%p182_p10), %s650_s15, 0 }
  0x17   : > { %s217_s4 = scalar_select %p216_p12, %s650_s15, 2 }
  0x18   : > { %s219_s5 = scalar_select %p218_p13, %s654_s16, 1 }
  0x19   : > { %s473_s6 = sshll.u32 %s217_s4, 1  ;;  %s486_s7 = sshll.u32 %s217_s4, 4  ;;  %v668_v0 = vmov (!%p477_p0), 0.0  }
  0x1a   : > { %s224_s8 = sadd.s32 %s473_s6, %s219_s5  ;;  %s231_s11 = scalar_lea.vmem %s851_s1, %s486_s7  ;;  %236 = vst [vmem:[#allocation2] sm:$0xff] (!%p477_p0), %v668_v0  ;;  %237 = vst [vmem:[#allocation2 + $0x8] sm:$0xff] (!%p477_p0), %v668_v0 }
  0x1b   : > { %s474_s20 = sshll.u32 %s224_s8, 3  ;;  %235 = sbr.rel (%p477_p0) target bundleno = 34 (0x22), region = 36 }
  0x1c   : > { %s226_s27 = scalar_lea.vmem %s850_s0, %s474_s20 }
  0x22 PF: > { %v242_v1 = vld [vmem:[%s226_s27] sm:$0xff]  ;;  %vm243_vm0 = vcmask 64512   ;;  %v241_v3 = vld [vmem:[%s231_s11 + $0x8] sm:$0xff]  ;;  %p480_p1 = scmp.ne.s32.totalorder %s650_s15, 2 }
  0x23   : > { %v240_v2 = vld [vmem:[%s231_s11] sm:$0xff]  ;;  %491 = vmatprep.subr.mxu0 %v242_v1  ;;  %v239_v4 = vld [vmem:[#allocation2 + $0x8] sm:$0xff]  ;;  %v669_v11 = vmov (!%p480_p1), 0  }
  0x24   : > { %493 = vmatprep.mubr.msk.f32.mxu0 %vm243_vm0, %v240_v2  ;;  %492 = vmatpush3.msra.mxu0 %v242_v1  ;;  %v238_v5 = vld [vmem:[#allocation2] sm:$0xff]  ;;  %v336_v12 = vld [vmem:[%s852_s2 + $0x8] sm:$0xff] (!%p480_p1) }
  0x25   : > { %494 = vmatmul.mubr.msk.f32.vlgmr.msra.gmra.mrb[0].mxu0 %vm243_vm0, %v241_v3  ;;  %v335_v10 = vld [vmem:[%s852_s2] sm:$0xff] (!%p480_p1)  ;;  %571 = vset.pattern.permute.xlu0 (!%p480_p1), %v669_v11 }
  0x26   : > { %339 = vperm.xlu0 (!%p480_p1), %571, %v335_v10  }
  0x2a   : > { %344 = vperm.xlu0 (!%p480_p1), %571, %v336_v12  }
  0xa5   : > { %v340_v14 = vpop.permute.xlu0 (!%p480_p1), %339 }
  0xa9   : > { %v345_v18 = vpop.permute.xlu0 (!%p480_p1), %344 }
  0xf6   : > { %332 = sbr.rel (%p480_p1) target bundleno = 265 (0x109), region = 40 }
  0xf8   : > { %v495_v6 = vpop.f32.mrb[0].mxu0 }
  0xf9   : > { %v326_v7 = vadd.f32 %v495_v6, %v239_v4  ;;  %v316_v8 = vpop.f32.mrb[1].mxu0 }
  0xfa   : > { %v325_v9 = vadd.f32 %v316_v8, %v238_v5 }
  0xfb   : > { %328 = vst [vmem:[#allocation2 + $0x8] sm:$0xff] %v326_v7 }
  0xfc   : > { %327 = vst [vmem:[#allocation2] sm:$0xff] %v325_v9 }
 0x102   : > { %v334_v16 = vld [vmem:[#allocation2 + $0x8] sm:$0xff] }
 0x103   : > { %v333_v13 = vld [vmem:[#allocation2] sm:$0xff]  ;;  %v348_v19 = vadd.f32 %v345_v18, %v334_v16 }
 0x104   : > { %v347_v15 = vadd.f32 %v340_v14, %v333_v13 }
 0x105   : > { %v350_v20 = vmax.f32 %v348_v19, 0.0 }
 0x106   : > { %v349_v17 = vmax.f32 %v347_v15, 0.0 }
 0x107   : > { %352 = vst [vmem:[%s775_s23 + $0x8] sm:$0xff] %v350_v20 }
 0x108   : > { %351 = vst [vmem:[%s775_s23] sm:$0xff] %v349_v17 }
 0x109 PF: > { %s487_s15 = sshll.u32 %s654_s16, 8  ;;  %s368_s10 = sshll.u32 %s775_s23, 4  ;;  %s794_s10 = int_to_ptr.vmem [resolvable:$true] %s368_s10 }
 0x10a   : > { %s791_s9 = scalar_lea.hbm %s853_s3, %s487_s15  ;;  %s798_s11 = scalar_lea.sflag [#allocation4], %s213_s29 }
 0x10b   : > { %s572_s20 = scalar_lea.vmem %s794_s10, 256  ;;  %s670_s16 = smov [#allocation3]  }
 0x10c   : > { %p573_p2 = scmp.ne.s32.totalorder %s794_s10, %s572_s20  ;;  %s576_s21 = sshll.u32 %s670_s16, 4  ;;  %s577_s21 = int_to_ptr.vmem [resolvable:$false] %s576_s21 }
 0x10d   : > { %s578_s26 = scalar_lea.vmem %s577_s21, 512  ;;  %p579_p6 = scmp.lt.s32.totalorder %s794_s10, %s577_s21 }
 0x10e   : > { %p574_p4 = pnand %p573_p2, %p742_p3  ;;  %p580_p7 = scmp.lt.s32.totalorder %s578_s26, %s572_s20 }
 0x110   : > { %p575_p5 = pneg %p574_p4  ;;  %p581_p8 = por %p580_p7, %p579_p6 }
 0x112   : > { %p582_p10 = pnand %p581_p8, %p575_p5 }
 0x114   : > { %585 = shalt.err (!%p582_p10)
}
 0x115   : > { %s586_s23 = scalar_lea.hbm %s791_s9, 256  ;;  %s590_s30 = scalar_lea.hbm %s853_s3, 512 }
 0x116   : > { %p587_p11 = scmp.ne.s32.totalorder %s791_s9, %s586_s23  ;;  %p591_p0 = scmp.lt.u32.totalorder %s791_s9, %s853_s3 }
 0x117   : > { %p592_p1 = scmp.lt.u32.totalorder %s590_s30, %s586_s23  ;;  %p594_p4 = scmp.lt.u32.totalorder %s586_s23, %s791_s9 }
 0x118   : > { %p588_p12 = pnand %p587_p11, %p742_p3 }
 0x119   : > { %p593_p2 = por %p592_p1, %p591_p0 }
 0x11a   : > { %p589_p13 = pneg %p588_p12 }
 0x11b   : > { %p595_p5 = por %p594_p4, %p593_p2 }
 0x11d   : > { %p596_p6 = pnand %p595_p5, %p589_p13 }
 0x11f   : > { %599 = shalt.err (!%p596_p6)
}
 0x120   : > { %s671_s6 = smov 128   ;;  %s672_s15 = smov 8  }
 0x121   : > { %496 = dma.vmem_to_hbm [thread:$0]  (%p742_p3), %s794_s10, 256, %s791_s9, %s798_s11, %s671_s6, %s671_s6, %s672_s15  }
 0x122 PF: > { %p502_p7 = scmp.ge.s32.totalorder %s666_s19, 2  ;;  %s383_s7 = sand.u32 1, %s638_s12  }
 0x123   : > { %s384_s8 = scalar_lea.sflag [#allocation4], %s383_s7 }
 0x124   : > { %p499_p8 = pnand %p502_p7, %p752_p9 }
 0x126   : > { %633 = dma.done.wait (!%p499_p8), %s384_s8, 256  }
 0x127   : > { %635 = vsyncadd (!%p499_p8), %s384_s8, 4294967040  ;;  %s16_s19 = sadd.s32 1, %s666_s19   ;;  %s858_s24 = sld [smem:[#allocation6_spill]] }
 0x128   : > { %p13_p10 = scmp.ge.s32.totalorder %s16_s19, 8   ;;  %s859_s12 = smov %s642_s13 }
 0x129   : > { %s860_s13 = smov %s646_s14  ;;  %s861_s14 = smov %s760_s28 }
 0x12a   : > { %s862_s15 = smov %s658_s17  ;;  %s863_s16 = smov %s662_s18 }
 0x12b   : > { %s864_s17 = smov %s867_s22  ;;  %15 = sbr.rel (!%p13_p10) target bundleno = 5 (0x5), region = 78 }
 0x12d   : > { %s865_s18 = smov %s858_s24 }
 0x132   :  { %389 = vsyncpa [#allocation4], 1 }
 0x133   :  { %391 = vsyncpa [#allocation4 + $0x1], 1 }

</bundles_post_ra>
